<compile_context>
chip_gen: v7x
topology: tpu7x:2x2x1
jax: 0.10.0
libtpu: 0.0.40
codegen_flags: <defaults>
</compile_context>

<pallas_src>
import jax
import jax.numpy as jnp
from jax.experimental import pallas as pl
from jax.experimental.pallas import tpu as pltpu

N_PAD = 128    # lane-dense output width
N_CLS = 5      # sentiment classes
HID_OFF = 8    # lane offset where the hidden state is packed inside the (B,128) output
B_TILE = 8     # batch tile per grid step (sublane-aligned)


def lstm_cls_kernel(x_ref, wih_ref, whh_ref, b_ref, wlin_ref, blin_ref, out_ref):
    S, Bt, I = x_ref.shape
    H = whh_ref.shape[0]
    G = 4 * H

    # One-shot input projection, hoisted off the serial recurrence (bias folded in).
    # i/f/o columns of wih/bias were pre-halved at init for the tanh->sigmoid fold.
    # Kept as a value (S*Bt*4H elems = a handful of vregs); no VMEM scratch needed.
    # TODO(synk): if S*Bt*4H ever grows past the vreg budget, spill gx to a VMEM scratch
    # and chunk the projection over S instead of fully unrolling.
    x2d = x_ref[...].reshape(S * Bt, I)
    gx = (jnp.dot(x2d, wih_ref[...], preferred_element_type=jnp.float32)
          + b_ref[...]).reshape(S, Bt, G)

    whh = whh_ref[...]  # (H, 4H) loop-invariant, i/f/o columns pre-halved

    h = jnp.zeros((Bt, H), jnp.float32)
    c = jnp.zeros((Bt, H), jnp.float32)
    for t in range(S):  # static unroll; gx[t] is a constant-index slice (one vreg)
        gates = gx[t] + jnp.dot(h, whh, preferred_element_type=jnp.float32)  # (Bt, 4H)
        t_all = jnp.tanh(gates)            # single full-tile EUP pass
        s_all = 0.5 * t_all + 0.5          # sigmoid(z) = 0.5*tanh(z/2)+0.5 (full-tile fma)
        i_g = s_all[:, 0 * H:1 * H]
        f_g = s_all[:, 1 * H:2 * H]
        g_g = t_all[:, 2 * H:3 * H]
        o_g = s_all[:, 3 * H:4 * H]
        c = f_g * c + i_g * g_g
        h = o_g * jnp.tanh(c)

    # Classifier + hidden extraction fused into one lane-dense matmul/store:
    # wlin_pad has W_lin^T in columns [0:5] and an HxH identity block in
    # columns [HID_OFF:HID_OFF+H], so this single (Bt,128) tile carries both outputs.
    out_ref[...] = (jnp.dot(h, wlin_ref[...], preferred_element_type=jnp.float32)
                    + blin_ref[...]).astype(out_ref.dtype)


def sentiment_forward(x, params, n_cls=N_CLS):
    """x: (B, S, I) float32, batch_first like the PyTorch module. Returns (logits, hidden)."""
    B, S, I = x.shape
    wih_t, whh_t, b, wlin_pad, blin_pad = params
    H = whh_t.shape[0]
    npad = wlin_pad.shape[1]
    assert B % B_TILE == 0, "batch must be a multiple of the 8-sublane tile"
    assert HID_OFF + H <= npad and n_cls <= HID_OFF

    # TODO(synk): at large S*B*I do this reorder in-kernel instead of a host-side pass.
    x_tm = jnp.transpose(x, (1, 0, 2))  # time-major (S, B, I)

    out_pad = pl.pallas_call(
        lstm_cls_kernel,
        out_shape=jax.ShapeDtypeStruct((B, npad), jnp.float32),
        grid=(B // B_TILE,),
        in_specs=(
            pl.BlockSpec((S, B_TILE, I), lambda b: (0, b, 0)),   # x (time-major)
            pl.BlockSpec((I, 4 * H), lambda b: (0, 0)),          # W_ih^T (i/f/o pre-halved)
            pl.BlockSpec((H, 4 * H), lambda b: (0, 0)),          # W_hh^T (i/f/o pre-halved)
            pl.BlockSpec((1, 4 * H), lambda b: (0, 0)),          # b_ih + b_hh (pre-halved)
            pl.BlockSpec((H, npad), lambda b: (0, 0)),           # [W_lin^T | I_H] padded
            pl.BlockSpec((1, npad), lambda b: (0, 0)),           # b_lin padded
        ),
        out_specs=pl.BlockSpec((B_TILE, npad), lambda b: (b, 0)),
        compiler_params=pltpu.CompilerParams(
            dimension_semantics=("parallel",),   # batch tiles shard across v7x's 2 TCs
            vmem_limit_bytes=32 * 1024 * 1024,
        ),
    )(x_tm, wih_t, whh_t, b, wlin_pad, blin_pad)

    logits = out_pad[:, :n_cls]
    hidden = out_pad[:, HID_OFF:HID_OFF + H]
    return logits, hidden


def init_raw_params(key, input_size, hidden_size, n_cls=N_CLS):
    # PyTorch nn.LSTM / nn.Linear init: U(-1/sqrt(H), 1/sqrt(H)).
    k = 1.0 / jnp.sqrt(jnp.float32(hidden_size))
    keys = jax.random.split(key, 6)
    w_ih = jax.random.uniform(keys[0], (4 * hidden_size, input_size), jnp.float32, -k, k)
    w_hh = jax.random.uniform(keys[1], (4 * hidden_size, hidden_size), jnp.float32, -k, k)
    b_ih = jax.random.uniform(keys[2], (4 * hidden_size,), jnp.float32, -k, k)
    b_hh = jax.random.uniform(keys[3], (4 * hidden_size,), jnp.float32, -k, k)
    w_lin = jax.random.uniform(keys[4], (n_cls, hidden_size), jnp.float32, -k, k)
    b_lin = jax.random.uniform(keys[5], (n_cls,), jnp.float32, -k, k)
    return w_ih, w_hh, b_ih, b_hh, w_lin, b_lin


def pack_params(raw, n_cls=N_CLS, n_pad=N_PAD, hid_off=HID_OFF):
    w_ih, w_hh, b_ih, b_hh, w_lin, b_lin = raw
    H = w_hh.shape[1]
    # Pre-halve i/f/o gate columns so sigmoid can be reconstructed from one tanh pass.
    gate_scale = jnp.concatenate([jnp.full((H,), 0.5), jnp.full((H,), 0.5),
                                  jnp.ones((H,)), jnp.full((H,), 0.5)]).astype(jnp.float32)
    wih_t = w_ih.T * gate_scale                            # (I, 4H)
    whh_t = w_hh.T * gate_scale                            # (H, 4H)
    b = ((b_ih + b_hh) * gate_scale).reshape(1, -1)        # (1, 4H)
    # Padded classifier: logits columns [0:5], identity block to carry h_T in [hid_off:hid_off+H].
    wlin_pad = jnp.zeros((H, n_pad), jnp.float32)
    wlin_pad = wlin_pad.at[:, :n_cls].set(w_lin.T)
    wlin_pad = wlin_pad.at[:, hid_off:hid_off + H].set(jnp.eye(H, dtype=jnp.float32))
    blin_pad = jnp.zeros((1, n_pad), jnp.float32).at[:, :n_cls].set(b_lin)
    return wih_t, whh_t, b, wlin_pad, blin_pad


def reference_forward(x, raw):
    """Pure-JAX reference matching the PyTorch module (eval mode)."""
    w_ih, w_hh, b_ih, b_hh, w_lin, b_lin = raw
    B, S, _ = x.shape
    H = w_hh.shape[1]
    h = jnp.zeros((B, H), jnp.float32)
    c = jnp.zeros((B, H), jnp.float32)
    for t in range(S):
        g = x[:, t, :] @ w_ih.T + b_ih + h @ w_hh.T + b_hh
        i = jax.nn.sigmoid(g[:, :H])
        f = jax.nn.sigmoid(g[:, H:2 * H])
        gg = jnp.tanh(g[:, 2 * H:3 * H])
        o = jax.nn.sigmoid(g[:, 3 * H:])
        c = f * c + i * gg
        h = o * jnp.tanh(c)
    logits = h @ w_lin.T + b_lin
    return logits, h


if __name__ == "__main__":
    B, S, I, H = 8, 8, 16, 32
    key = jax.random.PRNGKey(0)
    k_x, k_p = jax.random.split(key)
    x = jax.random.normal(k_x, (B, S, I), jnp.float32)

    raw = init_raw_params(k_p, I, H)
    params = pack_params(raw)

    logits, hidden = jax.jit(sentiment_forward)(x, params)
    jax.block_until_ready((logits, hidden))

    assert logits.shape == (B, N_CLS) and hidden.shape == (B, H)
    ref_logits, ref_hidden = reference_forward(x, raw)
    assert jnp.allclose(logits, ref_logits, rtol=1e-3, atol=1e-3)
    assert jnp.allclose(hidden, ref_hidden, rtol=1e-3, atol=1e-3)
    print("KERNEL_OK")
</pallas_src>

<mosaic_0001>
module attributes {stable_mosaic.version = 11 : i64} {
  func.func @lstm_cls_kernel(%arg0: i32, %arg1: memref<8x8x16xf32, #tpu.memory_space<vmem>>, %arg2: memref<16x128xf32, #tpu.memory_space<vmem>>, %arg3: memref<32x128xf32, #tpu.memory_space<vmem>>, %arg4: memref<1x128xf32, #tpu.memory_space<vmem>>, %arg5: memref<32x128xf32, #tpu.memory_space<vmem>>, %arg6: memref<1x128xf32, #tpu.memory_space<vmem>>, %arg7: memref<8x128xf32, #tpu.memory_space<vmem>>) attributes {dimension_semantics = [#tpu.dimension_semantics<parallel>], iteration_bounds = array<i64: 1>, scalar_prefetch = 0 : i64, scratch_operands = 0 : i64, tpu.core_type = #tpu.core_type<tc>, window_params = [{transform_indices = @transform_0, window_bounds = array<i64: 8, 8, 16>}, {pipeline_mode = #tpu.pipeline_mode<synchronous>, transform_indices = @transform_1, window_bounds = array<i64: 16, 128>}, {pipeline_mode = #tpu.pipeline_mode<synchronous>, transform_indices = @transform_2, window_bounds = array<i64: 32, 128>}, {pipeline_mode = #tpu.pipeline_mode<synchronous>, transform_indices = @transform_3, window_bounds = array<i64: 1, 128>}, {pipeline_mode = #tpu.pipeline_mode<synchronous>, transform_indices = @transform_4, window_bounds = array<i64: 32, 128>}, {pipeline_mode = #tpu.pipeline_mode<synchronous>, transform_indices = @transform_5, window_bounds = array<i64: 1, 128>}, {transform_indices = @transform_6, window_bounds = array<i64: 8, 128>}]} {
    %c0 = arith.constant 0 : index
    %c0_0 = arith.constant 0 : index
    %c0_1 = arith.constant 0 : index
    %0 = vector.load %arg1[%c0, %c0_0, %c0_1] : memref<8x8x16xf32, #tpu.memory_space<vmem>>, vector<8x8x16xf32>
    %1 = vector.shape_cast %0 : vector<8x8x16xf32> to vector<64x16xf32>
    %c0_2 = arith.constant 0 : index
    %c0_3 = arith.constant 0 : index
    %2 = vector.load %arg2[%c0_2, %c0_3] : memref<16x128xf32, #tpu.memory_space<vmem>>, vector<16x128xf32>
    %cst = arith.constant dense<0.000000e+00> : vector<64x128xf32>
    %3 = tpu.matmul %1, %2, %cst {dimension_numbers = #tpu.dot_dimension_numbers<[1], [0], [0], [1], [0, 0, 1, 1], [], []>} : vector<64x16xf32>, vector<16x128xf32>, vector<64x128xf32> -> vector<64x128xf32>
    %c0_4 = arith.constant 0 : index
    %c0_5 = arith.constant 0 : index
    %4 = vector.load %arg4[%c0_4, %c0_5] : memref<1x128xf32, #tpu.memory_space<vmem>>, vector<1x128xf32>
    %5 = vector.broadcast %4 : vector<1x128xf32> to vector<64x128xf32>
    %6 = arith.addf %3, %5 : vector<64x128xf32>
    %7 = vector.shape_cast %6 : vector<64x128xf32> to vector<8x8x128xf32>
    %c0_6 = arith.constant 0 : index
    %c0_7 = arith.constant 0 : index
    %8 = vector.load %arg3[%c0_6, %c0_7] : memref<32x128xf32, #tpu.memory_space<vmem>>, vector<32x128xf32>
    %cst_8 = arith.constant 0.000000e+00 : f32
    %9 = vector.broadcast %cst_8 : f32 to vector<8x32xf32>
    %cst_9 = arith.constant 0.000000e+00 : f32
    %10 = vector.broadcast %cst_9 : f32 to vector<8x32xf32>
    %11 = vector.extract_strided_slice %7 {offsets = [0, 0, 0], sizes = [1, 8, 128], strides = [1, 1, 1]} : vector<8x8x128xf32> to vector<1x8x128xf32>
    %12 = vector.shape_cast %11 : vector<1x8x128xf32> to vector<8x128xf32>
    %cst_10 = arith.constant dense<0.000000e+00> : vector<8x128xf32>
    %13 = tpu.matmul %9, %8, %cst_10 {dimension_numbers = #tpu.dot_dimension_numbers<[1], [0], [0], [1], [0, 0, 1, 1], [], []>} : vector<8x32xf32>, vector<32x128xf32>, vector<8x128xf32> -> vector<8x128xf32>
    %14 = arith.addf %12, %13 : vector<8x128xf32>
    %15 = math.tanh %14 : vector<8x128xf32>
    %cst_11 = arith.constant 5.000000e-01 : f32
    %16 = vector.broadcast %cst_11 : f32 to vector<8x128xf32>
    %17 = arith.mulf %16, %15 : vector<8x128xf32>
    %cst_12 = arith.constant 5.000000e-01 : f32
    %18 = vector.broadcast %cst_12 : f32 to vector<8x128xf32>
    %19 = arith.addf %17, %18 : vector<8x128xf32>
    %20 = vector.extract_strided_slice %19 {offsets = [0, 0], sizes = [8, 32], strides = [1, 1]} : vector<8x128xf32> to vector<8x32xf32>
    %21 = vector.extract_strided_slice %19 {offsets = [0, 32], sizes = [8, 32], strides = [1, 1]} : vector<8x128xf32> to vector<8x32xf32>
    %22 = vector.extract_strided_slice %15 {offsets = [0, 64], sizes = [8, 32], strides = [1, 1]} : vector<8x128xf32> to vector<8x32xf32>
    %23 = vector.extract_strided_slice %19 {offsets = [0, 96], sizes = [8, 32], strides = [1, 1]} : vector<8x128xf32> to vector<8x32xf32>
    %24 = arith.mulf %21, %10 : vector<8x32xf32>
    %25 = arith.mulf %20, %22 : vector<8x32xf32>
    %26 = arith.addf %24, %25 : vector<8x32xf32>
    %27 = math.tanh %26 : vector<8x32xf32>
    %28 = arith.mulf %23, %27 : vector<8x32xf32>
    %29 = vector.extract_strided_slice %7 {offsets = [1, 0, 0], sizes = [1, 8, 128], strides = [1, 1, 1]} : vector<8x8x128xf32> to vector<1x8x128xf32>
    %30 = vector.shape_cast %29 : vector<1x8x128xf32> to vector<8x128xf32>
    %cst_13 = arith.constant dense<0.000000e+00> : vector<8x128xf32>
    %31 = tpu.matmul %28, %8, %cst_13 {dimension_numbers = #tpu.dot_dimension_numbers<[1], [0], [0], [1], [0, 0, 1, 1], [], []>} : vector<8x32xf32>, vector<32x128xf32>, vector<8x128xf32> -> vector<8x128xf32>
    %32 = arith.addf %30, %31 : vector<8x128xf32>
    %33 = math.tanh %32 : vector<8x128xf32>
    %cst_14 = arith.constant 5.000000e-01 : f32
    %34 = vector.broadcast %cst_14 : f32 to vector<8x128xf32>
    %35 = arith.mulf %34, %33 : vector<8x128xf32>
    %cst_15 = arith.constant 5.000000e-01 : f32
    %36 = vector.broadcast %cst_15 : f32 to vector<8x128xf32>
    %37 = arith.addf %35, %36 : vector<8x128xf32>
    %38 = vector.extract_strided_slice %37 {offsets = [0, 0], sizes = [8, 32], strides = [1, 1]} : vector<8x128xf32> to vector<8x32xf32>
    %39 = vector.extract_strided_slice %37 {offsets = [0, 32], sizes = [8, 32], strides = [1, 1]} : vector<8x128xf32> to vector<8x32xf32>
    %40 = vector.extract_strided_slice %33 {offsets = [0, 64], sizes = [8, 32], strides = [1, 1]} : vector<8x128xf32> to vector<8x32xf32>
    %41 = vector.extract_strided_slice %37 {offsets = [0, 96], sizes = [8, 32], strides = [1, 1]} : vector<8x128xf32> to vector<8x32xf32>
    %42 = arith.mulf %39, %26 : vector<8x32xf32>
    %43 = arith.mulf %38, %40 : vector<8x32xf32>
    %44 = arith.addf %42, %43 : vector<8x32xf32>
    %45 = math.tanh %44 : vector<8x32xf32>
    %46 = arith.mulf %41, %45 : vector<8x32xf32>
    %47 = vector.extract_strided_slice %7 {offsets = [2, 0, 0], sizes = [1, 8, 128], strides = [1, 1, 1]} : vector<8x8x128xf32> to vector<1x8x128xf32>
    %48 = vector.shape_cast %47 : vector<1x8x128xf32> to vector<8x128xf32>
    %cst_16 = arith.constant dense<0.000000e+00> : vector<8x128xf32>
    %49 = tpu.matmul %46, %8, %cst_16 {dimension_numbers = #tpu.dot_dimension_numbers<[1], [0], [0], [1], [0, 0, 1, 1], [], []>} : vector<8x32xf32>, vector<32x128xf32>, vector<8x128xf32> -> vector<8x128xf32>
    %50 = arith.addf %48, %49 : vector<8x128xf32>
    %51 = math.tanh %50 : vector<8x128xf32>
    %cst_17 = arith.constant 5.000000e-01 : f32
    %52 = vector.broadcast %cst_17 : f32 to vector<8x128xf32>
    %53 = arith.mulf %52, %51 : vector<8x128xf32>
    %cst_18 = arith.constant 5.000000e-01 : f32
    %54 = vector.broadcast %cst_18 : f32 to vector<8x128xf32>
    %55 = arith.addf %53, %54 : vector<8x128xf32>
    %56 = vector.extract_strided_slice %55 {offsets = [0, 0], sizes = [8, 32], strides = [1, 1]} : vector<8x128xf32> to vector<8x32xf32>
    %57 = vector.extract_strided_slice %55 {offsets = [0, 32], sizes = [8, 32], strides = [1, 1]} : vector<8x128xf32> to vector<8x32xf32>
    %58 = vector.extract_strided_slice %51 {offsets = [0, 64], sizes = [8, 32], strides = [1, 1]} : vector<8x128xf32> to vector<8x32xf32>
    %59 = vector.extract_strided_slice %55 {offsets = [0, 96], sizes = [8, 32], strides = [1, 1]} : vector<8x128xf32> to vector<8x32xf32>
    %60 = arith.mulf %57, %44 : vector<8x32xf32>
    %61 = arith.mulf %56, %58 : vector<8x32xf32>
    %62 = arith.addf %60, %61 : vector<8x32xf32>
    %63 = math.tanh %62 : vector<8x32xf32>
    %64 = arith.mulf %59, %63 : vector<8x32xf32>
    %65 = vector.extract_strided_slice %7 {offsets = [3, 0, 0], sizes = [1, 8, 128], strides = [1, 1, 1]} : vector<8x8x128xf32> to vector<1x8x128xf32>
    %66 = vector.shape_cast %65 : vector<1x8x128xf32> to vector<8x128xf32>
    %cst_19 = arith.constant dense<0.000000e+00> : vector<8x128xf32>
    %67 = tpu.matmul %64, %8, %cst_19 {dimension_numbers = #tpu.dot_dimension_numbers<[1], [0], [0], [1], [0, 0, 1, 1], [], []>} : vector<8x32xf32>, vector<32x128xf32>, vector<8x128xf32> -> vector<8x128xf32>
    %68 = arith.addf %66, %67 : vector<8x128xf32>
    %69 = math.tanh %68 : vector<8x128xf32>
    %cst_20 = arith.constant 5.000000e-01 : f32
    %70 = vector.broadcast %cst_20 : f32 to vector<8x128xf32>
    %71 = arith.mulf %70, %69 : vector<8x128xf32>
    %cst_21 = arith.constant 5.000000e-01 : f32
    %72 = vector.broadcast %cst_21 : f32 to vector<8x128xf32>
    %73 = arith.addf %71, %72 : vector<8x128xf32>
    %74 = vector.extract_strided_slice %73 {offsets = [0, 0], sizes = [8, 32], strides = [1, 1]} : vector<8x128xf32> to vector<8x32xf32>
    %75 = vector.extract_strided_slice %73 {offsets = [0, 32], sizes = [8, 32], strides = [1, 1]} : vector<8x128xf32> to vector<8x32xf32>
    %76 = vector.extract_strided_slice %69 {offsets = [0, 64], sizes = [8, 32], strides = [1, 1]} : vector<8x128xf32> to vector<8x32xf32>
    %77 = vector.extract_strided_slice %73 {offsets = [0, 96], sizes = [8, 32], strides = [1, 1]} : vector<8x128xf32> to vector<8x32xf32>
    %78 = arith.mulf %75, %62 : vector<8x32xf32>
    %79 = arith.mulf %74, %76 : vector<8x32xf32>
    %80 = arith.addf %78, %79 : vector<8x32xf32>
    %81 = math.tanh %80 : vector<8x32xf32>
    %82 = arith.mulf %77, %81 : vector<8x32xf32>
    %83 = vector.extract_strided_slice %7 {offsets = [4, 0, 0], sizes = [1, 8, 128], strides = [1, 1, 1]} : vector<8x8x128xf32> to vector<1x8x128xf32>
    %84 = vector.shape_cast %83 : vector<1x8x128xf32> to vector<8x128xf32>
    %cst_22 = arith.constant dense<0.000000e+00> : vector<8x128xf32>
    %85 = tpu.matmul %82, %8, %cst_22 {dimension_numbers = #tpu.dot_dimension_numbers<[1], [0], [0], [1], [0, 0, 1, 1], [], []>} : vector<8x32xf32>, vector<32x128xf32>, vector<8x128xf32> -> vector<8x128xf32>
    %86 = arith.addf %84, %85 : vector<8x128xf32>
    %87 = math.tanh %86 : vector<8x128xf32>
    %cst_23 = arith.constant 5.000000e-01 : f32
    %88 = vector.broadcast %cst_23 : f32 to vector<8x128xf32>
    %89 = arith.mulf %88, %87 : vector<8x128xf32>
    %cst_24 = arith.constant 5.000000e-01 : f32
    %90 = vector.broadcast %cst_24 : f32 to vector<8x128xf32>
    %91 = arith.addf %89, %90 : vector<8x128xf32>
    %92 = vector.extract_strided_slice %91 {offsets = [0, 0], sizes = [8, 32], strides = [1, 1]} : vector<8x128xf32> to vector<8x32xf32>
    %93 = vector.extract_strided_slice %91 {offsets = [0, 32], sizes = [8, 32], strides = [1, 1]} : vector<8x128xf32> to vector<8x32xf32>
    %94 = vector.extract_strided_slice %87 {offsets = [0, 64], sizes = [8, 32], strides = [1, 1]} : vector<8x128xf32> to vector<8x32xf32>
    %95 = vector.extract_strided_slice %91 {offsets = [0, 96], sizes = [8, 32], strides = [1, 1]} : vector<8x128xf32> to vector<8x32xf32>
    %96 = arith.mulf %93, %80 : vector<8x32xf32>
    %97 = arith.mulf %92, %94 : vector<8x32xf32>
    %98 = arith.addf %96, %97 : vector<8x32xf32>
    %99 = math.tanh %98 : vector<8x32xf32>
    %100 = arith.mulf %95, %99 : vector<8x32xf32>
    %101 = vector.extract_strided_slice %7 {offsets = [5, 0, 0], sizes = [1, 8, 128], strides = [1, 1, 1]} : vector<8x8x128xf32> to vector<1x8x128xf32>
    %102 = vector.shape_cast %101 : vector<1x8x128xf32> to vector<8x128xf32>
    %cst_25 = arith.constant dense<0.000000e+00> : vector<8x128xf32>
    %103 = tpu.matmul %100, %8, %cst_25 {dimension_numbers = #tpu.dot_dimension_numbers<[1], [0], [0], [1], [0, 0, 1, 1], [], []>} : vector<8x32xf32>, vector<32x128xf32>, vector<8x128xf32> -> vector<8x128xf32>
    %104 = arith.addf %102, %103 : vector<8x128xf32>
    %105 = math.tanh %104 : vector<8x128xf32>
    %cst_26 = arith.constant 5.000000e-01 : f32
    %106 = vector.broadcast %cst_26 : f32 to vector<8x128xf32>
    %107 = arith.mulf %106, %105 : vector<8x128xf32>
    %cst_27 = arith.constant 5.000000e-01 : f32
    %108 = vector.broadcast %cst_27 : f32 to vector<8x128xf32>
    %109 = arith.addf %107, %108 : vector<8x128xf32>
    %110 = vector.extract_strided_slice %109 {offsets = [0, 0], sizes = [8, 32], strides = [1, 1]} : vector<8x128xf32> to vector<8x32xf32>
    %111 = vector.extract_strided_slice %109 {offsets = [0, 32], sizes = [8, 32], strides = [1, 1]} : vector<8x128xf32> to vector<8x32xf32>
    %112 = vector.extract_strided_slice %105 {offsets = [0, 64], sizes = [8, 32], strides = [1, 1]} : vector<8x128xf32> to vector<8x32xf32>
    %113 = vector.extract_strided_slice %109 {offsets = [0, 96], sizes = [8, 32], strides = [1, 1]} : vector<8x128xf32> to vector<8x32xf32>
    %114 = arith.mulf %111, %98 : vector<8x32xf32>
    %115 = arith.mulf %110, %112 : vector<8x32xf32>
    %116 = arith.addf %114, %115 : vector<8x32xf32>
    %117 = math.tanh %116 : vector<8x32xf32>
    %118 = arith.mulf %113, %117 : vector<8x32xf32>
    %119 = vector.extract_strided_slice %7 {offsets = [6, 0, 0], sizes = [1, 8, 128], strides = [1, 1, 1]} : vector<8x8x128xf32> to vector<1x8x128xf32>
    %120 = vector.shape_cast %119 : vector<1x8x128xf32> to vector<8x128xf32>
    %cst_28 = arith.constant dense<0.000000e+00> : vector<8x128xf32>
    %121 = tpu.matmul %118, %8, %cst_28 {dimension_numbers = #tpu.dot_dimension_numbers<[1], [0], [0], [1], [0, 0, 1, 1], [], []>} : vector<8x32xf32>, vector<32x128xf32>, vector<8x128xf32> -> vector<8x128xf32>
    %122 = arith.addf %120, %121 : vector<8x128xf32>
    %123 = math.tanh %122 : vector<8x128xf32>
    %cst_29 = arith.constant 5.000000e-01 : f32
    %124 = vector.broadcast %cst_29 : f32 to vector<8x128xf32>
    %125 = arith.mulf %124, %123 : vector<8x128xf32>
    %cst_30 = arith.constant 5.000000e-01 : f32
    %126 = vector.broadcast %cst_30 : f32 to vector<8x128xf32>
    %127 = arith.addf %125, %126 : vector<8x128xf32>
    %128 = vector.extract_strided_slice %127 {offsets = [0, 0], sizes = [8, 32], strides = [1, 1]} : vector<8x128xf32> to vector<8x32xf32>
    %129 = vector.extract_strided_slice %127 {offsets = [0, 32], sizes = [8, 32], strides = [1, 1]} : vector<8x128xf32> to vector<8x32xf32>
    %130 = vector.extract_strided_slice %123 {offsets = [0, 64], sizes = [8, 32], strides = [1, 1]} : vector<8x128xf32> to vector<8x32xf32>
    %131 = vector.extract_strided_slice %127 {offsets = [0, 96], sizes = [8, 32], strides = [1, 1]} : vector<8x128xf32> to vector<8x32xf32>
    %132 = arith.mulf %129, %116 : vector<8x32xf32>
    %133 = arith.mulf %128, %130 : vector<8x32xf32>
    %134 = arith.addf %132, %133 : vector<8x32xf32>
    %135 = math.tanh %134 : vector<8x32xf32>
    %136 = arith.mulf %131, %135 : vector<8x32xf32>
    %137 = vector.extract_strided_slice %7 {offsets = [7, 0, 0], sizes = [1, 8, 128], strides = [1, 1, 1]} : vector<8x8x128xf32> to vector<1x8x128xf32>
    %138 = vector.shape_cast %137 : vector<1x8x128xf32> to vector<8x128xf32>
    %cst_31 = arith.constant dense<0.000000e+00> : vector<8x128xf32>
    %139 = tpu.matmul %136, %8, %cst_31 {dimension_numbers = #tpu.dot_dimension_numbers<[1], [0], [0], [1], [0, 0, 1, 1], [], []>} : vector<8x32xf32>, vector<32x128xf32>, vector<8x128xf32> -> vector<8x128xf32>
    %140 = arith.addf %138, %139 : vector<8x128xf32>
    %141 = math.tanh %140 : vector<8x128xf32>
    %cst_32 = arith.constant 5.000000e-01 : f32
    %142 = vector.broadcast %cst_32 : f32 to vector<8x128xf32>
    %143 = arith.mulf %142, %141 : vector<8x128xf32>
    %cst_33 = arith.constant 5.000000e-01 : f32
    %144 = vector.broadcast %cst_33 : f32 to vector<8x128xf32>
    %145 = arith.addf %143, %144 : vector<8x128xf32>
    %146 = vector.extract_strided_slice %145 {offsets = [0, 0], sizes = [8, 32], strides = [1, 1]} : vector<8x128xf32> to vector<8x32xf32>
    %147 = vector.extract_strided_slice %145 {offsets = [0, 32], sizes = [8, 32], strides = [1, 1]} : vector<8x128xf32> to vector<8x32xf32>
    %148 = vector.extract_strided_slice %141 {offsets = [0, 64], sizes = [8, 32], strides = [1, 1]} : vector<8x128xf32> to vector<8x32xf32>
    %149 = vector.extract_strided_slice %145 {offsets = [0, 96], sizes = [8, 32], strides = [1, 1]} : vector<8x128xf32> to vector<8x32xf32>
    %150 = arith.mulf %147, %134 : vector<8x32xf32>
    %151 = arith.mulf %146, %148 : vector<8x32xf32>
    %152 = arith.addf %150, %151 : vector<8x32xf32>
    %153 = math.tanh %152 : vector<8x32xf32>
    %154 = arith.mulf %149, %153 : vector<8x32xf32>
    %c0_34 = arith.constant 0 : index
    %c0_35 = arith.constant 0 : index
    %155 = vector.load %arg5[%c0_34, %c0_35] : memref<32x128xf32, #tpu.memory_space<vmem>>, vector<32x128xf32>
    %cst_36 = arith.constant dense<0.000000e+00> : vector<8x128xf32>
    %156 = tpu.matmul %154, %155, %cst_36 {dimension_numbers = #tpu.dot_dimension_numbers<[1], [0], [0], [1], [0, 0, 1, 1], [], []>} : vector<8x32xf32>, vector<32x128xf32>, vector<8x128xf32> -> vector<8x128xf32>
    %c0_37 = arith.constant 0 : index
    %c0_38 = arith.constant 0 : index
    %157 = vector.load %arg6[%c0_37, %c0_38] : memref<1x128xf32, #tpu.memory_space<vmem>>, vector<1x128xf32>
    %158 = vector.broadcast %157 : vector<1x128xf32> to vector<8x128xf32>
    %159 = arith.addf %156, %158 : vector<8x128xf32>
    %c0_39 = arith.constant 0 : index
    %c0_40 = arith.constant 0 : index
    %160 = vector.load %arg7[%c0_39, %c0_40] : memref<8x128xf32, #tpu.memory_space<vmem>>, vector<8x128xf32>
    tpu.vector_store %arg7[%c0_39, %c0_40], %159 {strides = array<i32>} : memref<8x128xf32, #tpu.memory_space<vmem>>, vector<8x128xf32>,
    return
  }
  func.func @transform_0(%arg0: i32) -> (i32, i32, i32) {
    %c0_i32 = arith.constant 0 : i32
    %c0_i32_0 = arith.constant 0 : i32
    %c0_i32_1 = arith.constant 0 : i32
    return %c0_i32, %arg0, %c0_i32_0 : i32, i32, i32
  }
  func.func @transform_1(%arg0: i32) -> (i32, i32) {
    %c0_i32 = arith.constant 0 : i32
    %c0_i32_0 = arith.constant 0 : i32
    %c0_i32_1 = arith.constant 0 : i32
    return %c0_i32, %c0_i32_0 : i32, i32
  }
  func.func @transform_2(%arg0: i32) -> (i32, i32) {
    %c0_i32 = arith.constant 0 : i32
    %c0_i32_0 = arith.constant 0 : i32
    %c0_i32_1 = arith.constant 0 : i32
    return %c0_i32, %c0_i32_0 : i32, i32
  }
  func.func @transform_3(%arg0: i32) -> (i32, i32) {
    %c0_i32 = arith.constant 0 : i32
    %c0_i32_0 = arith.constant 0 : i32
    %c0_i32_1 = arith.constant 0 : i32
    return %c0_i32, %c0_i32_0 : i32, i32
  }
  func.func @transform_4(%arg0: i32) -> (i32, i32) {
    %c0_i32 = arith.constant 0 : i32
    %c0_i32_0 = arith.constant 0 : i32
    %c0_i32_1 = arith.constant 0 : i32
    return %c0_i32, %c0_i32_0 : i32, i32
  }
  func.func @transform_5(%arg0: i32) -> (i32, i32) {
    %c0_i32 = arith.constant 0 : i32
    %c0_i32_0 = arith.constant 0 : i32
    %c0_i32_1 = arith.constant 0 : i32
    return %c0_i32, %c0_i32_0 : i32, i32
  }
  func.func @transform_6(%arg0: i32) -> (i32, i32) {
    %c0_i32 = arith.constant 0 : i32
    %c0_i32_0 = arith.constant 0 : i32
    return %arg0, %c0_i32 : i32, i32
  }
}

</mosaic_0001>

<bundles_post_ra>
// kernel: sentiment_forward.1
= control target key start
LH: loop header
LB: loop body
LE: loop exit
PB: predicated region body
PF: predicated region fallthrough
CT: control target
= control target key end

     0   :  { %vm40_vm0 = vcmask 130048   ;;  %v1315_v0 = vmov 0.0|0.0   ;;  %vm1316_vm1 = vmmov 0   ;;  %v1317_v4 = vmov 0.0   ;;  %s1318_s13 = smov 64   ;;  %s1319_s14 = smov 32   ;;  %s1545_s1 = inlined_call_operand.vmem [shape: f32[16,128], index: 1, kind: input, shape index: {}]   ;;  %s1546_s2 = inlined_call_operand.vmem [shape: f32[32,128], index: 2, kind: input, shape index: {}]   ;;  %s1547_s0 = inlined_call_operand.vmem [shape: f32[8,8,16], index: 0, kind: input, shape index: {}]   ;;  %s1548_s3 = inlined_call_operand.vmem [shape: f32[1,128], index: 3, kind: input, shape index: {}]   ;;  %s1549_s4 = inlined_call_operand.vmem [shape: f32[32,128], index: 4, kind: input, shape index: {}]   ;;  %s1550_s5 = inlined_call_operand.vmem [shape: f32[1,128], index: 5, kind: input, shape index: {}]   ;;  %s1551_s6 = inlined_call_operand.vmem [shape: f32[8,128], index: 6, kind: output, shape index: {}]  }
   0x1   :  { %1224 = vmatprep.subr.bf16.mxu1 %v1315_v0  ;;  %v31_v1 = vld [vmem:[%s1545_s1] sm:$0xff]  ;;  %v32_v2 = vld [vmem:[%s1545_s1 + $0x8] sm:$0xff]  ;;  %1129 = vmatprep.mubr.msk.f32.mxu1 %vm1316_vm1, %v1317_v4  ;;  %v172_v9 = vld [vmem:[%s1546_s2 + $0x10] sm:$0xff]  ;;  %vm174_vm2 = vcmask 261120  }
   0x2   :  { %v170_v3 = vld [vmem:[%s1546_s2] sm:$0xff]  ;;  %v1220_v5 = vpack.c.bf16 %v32_v2, %v31_v1  ;;  %v171_v6 = vld [vmem:[%s1546_s2 + $0x8] sm:$0xff]  ;;  %v173_v10 = vld [vmem:[%s1546_s2 + $0x18] sm:$0xff] }
   0x3   :  { %v23_v7 = vld [vmem:[%s1547_s0] sm:$0xff]  ;;  %v1373_v8 = vpack.c.bf16 %v171_v6, %v170_v3  ;;  %v24_v11 = vld [vmem:[%s1547_s0 + $0x8] sm:$0xff]  ;;  %v1386_v12 = vpack.c.bf16 %v173_v10, %v172_v9  ;;  %v25_v44 = vld [vmem:[%s1547_s0 + $0x10] sm:$0xff] }
   0x4   :  { %1109 = vmatprep.mubr.msk.f32.mxu0 %vm40_vm0, %v23_v7  ;;  %1221 = vmatprep.subr.bf16.mxu0 %v1220_v5  ;;  %v1407_v13 = vld [vmem:[%s1548_s3] ss:$0 sm:$0xff]  ;;  %v26_v45 = vld [vmem:[%s1547_s0 + $0x18] sm:$0xff]  ;;  %v28_v47 = vld [vmem:[%s1547_s0 + $0x28] sm:$0xff] }
   0x5   :  { %1226 = vmatpush3.bf16.msra.mxu1 %v1373_v8  ;;  %1223 = vmatpush3.bf16.msra.mxu0 %v1220_v5  ;;  %v27_v46 = vld [vmem:[%s1547_s0 + $0x20] sm:$0xff]  ;;  %v29_v48 = vld [vmem:[%s1547_s0 + $0x30] sm:$0xff]  ;;  %v30_v49 = vld [vmem:[%s1547_s0 + $0x38] sm:$0xff] }
   0x6   :  { %1227 = vmatprep.subr.bf16.mxu1 %v1315_v0  ;;  %1236 = vmatprep.subr.bf16.mxu0 %v1315_v0 }
   0x8   :  { %1110 = vmatmul.mubr.msk.f32.vlgmr.msra.gmra.mrb[0].mxu0 %vm40_vm0, %v24_v11 }
   0x9   :  { %1229 = vmatpush3.bf16.msra.mxu1 %v1386_v12  ;;  %1238 = vmatpush3.bf16.msra.mxu0 %v1373_v8 }
   0xa   :  { %1230 = vmatprep.subr.bf16.mxu1 %v1315_v0  ;;  %1239 = vmatprep.subr.bf16.mxu0 %v1315_v0 }
   0xb   :  { %1112 = vmatprep.mubr.msk.f32.mxu0 %vm40_vm0, %v25_v44 }
   0xc   :  { %1130 = vmatmul.mubr.f32.vlgmr.msra.gmra.mrb[0].mxu1 %v1317_v4  ;;  %1113 = vmatmul.mubr.msk.f32.gmra.mrb[2].mxu0 %vm40_vm0, %v26_v45 }
   0xd   :  { %1232 = vmatpush3.bf16.msra.mxu1 %v1373_v8  ;;  %1140 = vmatprep.mubr.msk.f32.mxu1 %vm1316_vm1, %v1317_v4 }
   0xe   :  { %1233 = vmatprep.subr.bf16.mxu1 %v1315_v0  ;;  %1241 = vmatpush3.bf16.msra.mxu0 %v1386_v12 }
   0xf   :  { %1248 = vmatprep.subr.bf16.mxu0 %v1315_v0  ;;  %1115 = vmatprep.mubr.msk.f32.mxu0 %vm40_vm0, %v27_v46 }
  0x10   :  { %1116 = vmatmul.mubr.msk.f32.gmra.mrb[4].mxu0 %vm40_vm0, %v28_v47 }
  0x11   :  { %1235 = vmatpush3.bf16.msra.mxu1 %v1386_v12  ;;  %1118 = vmatprep.mubr.msk.f32.mxu0 %vm40_vm0, %v29_v48 }
  0x12   :  { %1242 = vmatprep.subr.bf16.mxu1 %v1315_v0 }
  0x14   :  { %1119 = vmatmul.mubr.msk.f32.gmra.mrb[6].mxu0 %vm40_vm0, %v30_v49 }
  0x15   :  { %1151 = vmatprep.mubr.msk.f32.mxu0 %vm1316_vm1, %v1317_v4 }
  0xdb   :  { %v1111_v14 = vpop.f32.mrb[0].mxu0 }
  0xdc   :  { %v131_v15 = vpop.f32.mrb[1].mxu0  ;;  %v137_v32 = vadd.f32 %v1111_v14, %v1407_v13 }
  0xdd   :  { %v132_v16 = vadd.f32 %v1407_v13, %v131_v15 }
  0xdf   :  { %v244_v17 = vpop.f32.mrb[0].mxu1  ;;  %v1114_v53 = vpop.f32.mrb[2].mxu0 }
  0xe0   :  { %v248_v18 = vadd.f32 %v244_v17, %v132_v16  ;;  %v1131_v19 = vpop.f32.mrb[1].mxu1  ;;  %v141_v54 = vpop.f32.mrb[3].mxu0  ;;  %v147_v17 = vadd.f32 %v1114_v53, %v1407_v13 }
  0xe1   :  { %v142_v60 = vadd.f32 %v1407_v13, %v141_v54 }
  0xe2   :  { %1283 = vtanh.f32 %v248_v18 }
  0xe3   :  { %v1452_v55 = vpop.f32.mrb[4].mxu0 }
  0xe4   :  { %v1454_v56 = vpop.f32.mrb[5].mxu0  ;;  %v157_v49 = vadd.f32 %v1452_v55, %v1407_v13 }
  0xe7   :  { %v1456_v57 = vpop.f32.mrb[6].mxu0 }
  0xe8   :  { %v1458_v58 = vpop.f32.mrb[7].mxu0 }
  0xec   :  { %v1284_v20 = vpop.eup %1283 }
  0xed   :  { %254 = vrot.lane.b32.xlu0 %v1284_v20, %s1318_s13  ;;  %v250_v21 = vmul.f32 0.5, %v1284_v20 }
  0xef   :  { %v251_v22 = vadd.f32 0.5, %v250_v21 }
  0xf1   :  { %v252_v25 = vmul.f32 0.0, %v251_v22 }
 0x15f   :  { %v255_v23 = vpop.permute.xlu0 %254 }
 0x160   :  { %v257_v24 = vmul.f32 %v255_v23, %v251_v22 }
 0x162   :  { %259 = vrot.lane.b32.xlu0 %v257_v24, %s1319_s14 }
 0x1d4   :  { %v260_v26 = vpop.permute.xlu0 %259 }
 0x1d5   :  { %v262_v27 = vadd.f32 %v260_v26, %v252_v25 }
 0x1d7   :  { %1285 = vtanh.f32 %v262_v27 }
 0x1e1   :  { %v1286_v28 = vpop.eup %1285 }
 0x1e2   :  { %265 = vrot.lane.b32.xlu1 %v1286_v28, %s1318_s13 }
 0x254   :  { %v266_v29 = vpop.permute.xlu1 %265 }
 0x255   :  { %v268_v30 = vmul.f32 %v266_v29, %v251_v22 }
 0x257   :  { %270 = vrot.lane.b32.xlu1 %v268_v30, %s1319_s14 }
 0x2c9   :  { %v271_v31 = vpop.permute.xlu1 %270 }
 0x2ca   :  { %1141 = vmatmul.mubr.msk.f32.vlgmr.msra.gmra.mrb[2].mxu1 %vm174_vm2, %v271_v31 }
 0x2cb   :  { %1244 = vmatpush3.bf16.msra.mxu1 %v1373_v8  ;;  %1162 = vmatprep.mubr.msk.f32.mxu1 %vm1316_vm1, %v1317_v4 }
 0x2cc   :  { %1245 = vmatprep.subr.bf16.mxu1 %v1315_v0 }
 0x2cf   :  { %1247 = vmatpush3.bf16.msra.mxu1 %v1386_v12 }
 0x2d0   :  { %1254 = vmatprep.subr.bf16.mxu1 %v1315_v0 }
 0x39d   :  { %v340_v33 = vpop.f32.mrb[2].mxu1 }
 0x39e   :  { %v344_v34 = vadd.f32 %v340_v33, %v137_v32  ;;  %v1142_v35 = vpop.f32.mrb[3].mxu1  ;;  %v152_v33 = vadd.f32 %v1407_v13, %v1454_v56 }
 0x3a0   :  { %1287 = vtanh.f32 %v344_v34 }
 0x3aa   :  { %v1288_v36 = vpop.eup %1287 }
 0x3ab   :  { %350 = vrot.lane.b32.xlu0 %v1288_v36, %s1318_s13  ;;  %v346_v37 = vmul.f32 0.5, %v1288_v36 }
 0x3ad   :  { %v347_v38 = vadd.f32 0.5, %v346_v37 }
 0x3af   :  { %v348_v41 = vmul.f32 %v347_v38, %v262_v27 }
 0x41d   :  { %v351_v39 = vpop.permute.xlu0 %350 }
 0x41e   :  { %v353_v40 = vmul.f32 %v351_v39, %v347_v38 }
 0x420   :  { %355 = vrot.lane.b32.xlu1 %v353_v40, %s1319_s14 }
 0x492   :  { %v356_v42 = vpop.permute.xlu1 %355 }
 0x493   :  { %v358_v43 = vadd.f32 %v356_v42, %v348_v41 }
 0x495   :  { %1289 = vtanh.f32 %v358_v43 }
 0x49f   :  { %v1290_v50 = vpop.eup %1289 }
 0x4a0   :  { %361 = vrot.lane.b32.xlu0 %v1290_v50, %s1318_s13 }
 0x512   :  { %v362_v51 = vpop.permute.xlu0 %361 }
 0x513   :  { %v364_v52 = vmul.f32 %v362_v51, %v347_v38 }
 0x515   :  { %366 = vrot.lane.b32.xlu1 %v364_v52, %s1319_s14 }
 0x587   :  { %v367_v59 = vpop.permute.xlu1 %366 }
 0x588   :  { %1152 = vmatmul.mubr.msk.f32.vlgmr.msra.gmra.mrb[8].mxu0 %vm174_vm2, %v367_v59 }
 0x589   :  { %1250 = vmatpush3.bf16.msra.mxu0 %v1373_v8  ;;  %1173 = vmatprep.mubr.msk.f32.mxu0 %vm1316_vm1, %v1317_v4 }
 0x58a   :  { %1251 = vmatprep.subr.bf16.mxu0 %v1315_v0 }
 0x58d   :  { %1253 = vmatpush3.bf16.msra.mxu0 %v1386_v12 }
 0x58e   :  { %1260 = vmatprep.subr.bf16.mxu0 %v1315_v0 }
 0x65b   :  { %v436_v61 = vpop.f32.mrb[8].mxu0 }
 0x65c   :  { %v440_v62 = vadd.f32 %v436_v61, %v142_v60  ;;  %v1153_v63 = vpop.f32.mrb[9].mxu0 }
 0x65e   :  { %1291 = vtanh.f32 %v440_v62 }
 0x668   :  { %v1292_v1 = vpop.eup %1291 }
 0x669   :  { %446 = vrot.lane.b32.xlu0 %v1292_v1, %s1318_s13  ;;  %v442_v2 = vmul.f32 0.5, %v1292_v1 }
 0x66b   :  { %v443_v3 = vadd.f32 0.5, %v442_v2  ;;  %v162_v2 = vadd.f32 %v1407_v13, %v1458_v58 }
 0x66d   :  { %v444_v7 = vmul.f32 %v443_v3, %v358_v43 }
 0x6db   :  { %v447_v5 = vpop.permute.xlu0 %446 }
 0x6dc   :  { %v449_v6 = vmul.f32 %v447_v5, %v443_v3 }
 0x6de   :  { %451 = vrot.lane.b32.xlu1 %v449_v6, %s1319_s14 }
 0x750   :  { %v452_v9 = vpop.permute.xlu1 %451 }
 0x751   :  { %v454_v10 = vadd.f32 %v452_v9, %v444_v7 }
 0x753   :  { %1293 = vtanh.f32 %v454_v10 }
 0x75d   :  { %v1294_v11 = vpop.eup %1293 }
 0x75e   :  { %457 = vrot.lane.b32.xlu0 %v1294_v11, %s1318_s13 }
 0x7d0   :  { %v458_v14 = vpop.permute.xlu0 %457 }
 0x7d1   :  { %v460_v15 = vmul.f32 %v458_v14, %v443_v3 }
 0x7d3   :  { %462 = vrot.lane.b32.xlu1 %v460_v15, %s1319_s14 }
 0x845   :  { %v463_v16 = vpop.permute.xlu1 %462 }
 0x846   :  { %1163 = vmatmul.mubr.msk.f32.vlgmr.msra.gmra.mrb[4].mxu1 %vm174_vm2, %v463_v16 }
 0x847   :  { %1256 = vmatpush3.bf16.msra.mxu1 %v1373_v8  ;;  %1184 = vmatprep.mubr.msk.f32.mxu1 %vm1316_vm1, %v1317_v4 }
 0x848   :  { %1257 = vmatprep.subr.bf16.mxu1 %v1315_v0 }
 0x84b   :  { %1259 = vmatpush3.bf16.msra.mxu1 %v1386_v12 }
 0x84c   :  { %1266 = vmatprep.subr.bf16.mxu1 %v1315_v0 }
 0x919   :  { %v532_v18 = vpop.f32.mrb[4].mxu1 }
 0x91a   :  { %v536_v19 = vadd.f32 %v532_v18, %v147_v17  ;;  %v1164_v20 = vpop.f32.mrb[5].mxu1 }
 0x91b   :  { %v167_v20 = vadd.f32 %v1456_v57, %v1407_v13  ;;  %v941_v13 = vld [vmem:[%s1549_s4] sm:$0xff]  ;;  %v942_v57 = vld [vmem:[%s1549_s4 + $0x8] sm:$0xff] }
 0x91c   :  { %1295 = vtanh.f32 %v536_v19 }
 0x926   :  { %v1296_v21 = vpop.eup %1295 }
 0x927   :  { %542 = vrot.lane.b32.xlu0 %v1296_v21, %s1318_s13  ;;  %v538_v22 = vmul.f32 0.5, %v1296_v21 }
 0x929   :  { %v539_v23 = vadd.f32 0.5, %v538_v22 }
 0x92b   :  { %v540_v26 = vmul.f32 %v539_v23, %v454_v10 }
 0x999   :  { %v543_v24 = vpop.permute.xlu0 %542 }
 0x99a   :  { %v545_v25 = vmul.f32 %v543_v24, %v539_v23 }
 0x99c   :  { %547 = vrot.lane.b32.xlu1 %v545_v25, %s1319_s14 }
 0xa0e   :  { %v548_v27 = vpop.permute.xlu1 %547 }
 0xa0f   :  { %v550_v28 = vadd.f32 %v548_v27, %v540_v26 }
 0xa11   :  { %1297 = vtanh.f32 %v550_v28 }
 0xa1b   :  { %v1298_v29 = vpop.eup %1297 }
 0xa1c   :  { %553 = vrot.lane.b32.xlu0 %v1298_v29, %s1318_s13 }
 0xa8e   :  { %v554_v30 = vpop.permute.xlu0 %553 }
 0xa8f   :  { %v556_v31 = vmul.f32 %v554_v30, %v539_v23 }
 0xa91   :  { %558 = vrot.lane.b32.xlu1 %v556_v31, %s1319_s14 }
 0xb03   :  { %v559_v32 = vpop.permute.xlu1 %558 }
 0xb04   :  { %1174 = vmatmul.mubr.msk.f32.vlgmr.msra.gmra.mrb[10].mxu0 %vm174_vm2, %v559_v32  ;;  %v943_v32 = vld [vmem:[%s1549_s4 + $0x10] sm:$0xff] }
 0xb05   :  { %1262 = vmatpush3.bf16.msra.mxu0 %v1373_v8  ;;  %1195 = vmatprep.mubr.msk.f32.mxu0 %vm1316_vm1, %v1317_v4 }
 0xb06   :  { %1263 = vmatprep.subr.bf16.mxu0 %v1315_v0 }
 0xb09   :  { %1265 = vmatpush3.bf16.msra.mxu0 %v1386_v12 }
 0xb0a   :  { %1272 = vmatprep.subr.bf16.mxu0 %v1315_v0 }
 0xbd7   :  { %v628_v34 = vpop.f32.mrb[10].mxu0 }
 0xbd8   :  { %v632_v35 = vadd.f32 %v628_v34, %v152_v33  ;;  %v1175_v36 = vpop.f32.mrb[11].mxu0  ;;  %v1273_v33 = vpack.c.bf16 %v942_v57, %v941_v13  ;;  %v944_v34 = vld [vmem:[%s1549_s4 + $0x18] sm:$0xff] }
 0xbda   :  { %1299 = vtanh.f32 %v632_v35  ;;  %v1276_v35 = vpack.c.bf16 %v944_v34, %v943_v32 }
 0xbe4   :  { %v1300_v37 = vpop.eup %1299 }
 0xbe5   :  { %638 = vrot.lane.b32.xlu0 %v1300_v37, %s1318_s13  ;;  %v634_v38 = vmul.f32 0.5, %v1300_v37 }
 0xbe7   :  { %v635_v39 = vadd.f32 0.5, %v634_v38 }
 0xbe9   :  { %v636_v42 = vmul.f32 %v635_v39, %v550_v28 }
 0xc57   :  { %v639_v40 = vpop.permute.xlu0 %638 }
 0xc58   :  { %v641_v41 = vmul.f32 %v639_v40, %v635_v39  ;;  %v1048_v40 = vld [vmem:[%s1550_s5] ss:$0 sm:$0xff] }
 0xc5a   :  { %643 = vrot.lane.b32.xlu1 %v641_v41, %s1319_s14 }
 0xccc   :  { %v644_v43 = vpop.permute.xlu1 %643 }
 0xccd   :  { %v646_v44 = vadd.f32 %v644_v43, %v636_v42 }
 0xccf   :  { %1301 = vtanh.f32 %v646_v44 }
 0xcd9   :  { %v1302_v45 = vpop.eup %1301 }
 0xcda   :  { %649 = vrot.lane.b32.xlu0 %v1302_v45, %s1318_s13 }
 0xd4c   :  { %v650_v46 = vpop.permute.xlu0 %649 }
 0xd4d   :  { %v652_v47 = vmul.f32 %v650_v46, %v635_v39 }
 0xd4f   :  { %654 = vrot.lane.b32.xlu1 %v652_v47, %s1319_s14 }
 0xdc1   :  { %v655_v48 = vpop.permute.xlu1 %654 }
 0xdc2   :  { %1185 = vmatmul.mubr.msk.f32.vlgmr.msra.gmra.mrb[6].mxu1 %vm174_vm2, %v655_v48 }
 0xdc3   :  { %1268 = vmatpush3.bf16.msra.mxu1 %v1373_v8  ;;  %1206 = vmatprep.mubr.msk.f32.mxu1 %vm1316_vm1, %v1317_v4 }
 0xdc4   :  { %1269 = vmatprep.subr.bf16.mxu1 %v1315_v0 }
 0xdc7   :  { %1271 = vmatpush3.bf16.msra.mxu1 %v1386_v12 }
 0xe95   :  { %v724_v50 = vpop.f32.mrb[6].mxu1 }
 0xe96   :  { %v728_v51 = vadd.f32 %v724_v50, %v157_v49  ;;  %v1186_v52 = vpop.f32.mrb[7].mxu1 }
 0xe98   :  { %1303 = vtanh.f32 %v728_v51 }
 0xea2   :  { %v1304_v53 = vpop.eup %1303 }
 0xea3   :  { %734 = vrot.lane.b32.xlu0 %v1304_v53, %s1318_s13  ;;  %v730_v54 = vmul.f32 0.5, %v1304_v53 }
 0xea5   :  { %v731_v56 = vadd.f32 0.5, %v730_v54 }
 0xea7   :  { %v732_v60 = vmul.f32 %v731_v56, %v646_v44 }
 0xf15   :  { %v735_v8 = vpop.permute.xlu0 %734 }
 0xf16   :  { %v737_v59 = vmul.f32 %v735_v8, %v731_v56 }
 0xf18   :  { %739 = vrot.lane.b32.xlu1 %v737_v59, %s1319_s14 }
 0xf8a   :  { %v740_v61 = vpop.permute.xlu1 %739 }
 0xf8b   :  { %v742_v62 = vadd.f32 %v740_v61, %v732_v60 }
 0xf8d   :  { %1305 = vtanh.f32 %v742_v62 }
 0xf97   :  { %v1306_v12 = vpop.eup %1305 }
 0xf98   :  { %745 = vrot.lane.b32.xlu0 %v1306_v12, %s1318_s13 }
0x100a   :  { %v746_v55 = vpop.permute.xlu0 %745 }
0x100b   :  { %v748_v63 = vmul.f32 %v746_v55, %v731_v56 }
0x100d   :  { %750 = vrot.lane.b32.xlu1 %v748_v63, %s1319_s14 }
0x107f   :  { %v751_v1 = vpop.permute.xlu1 %750 }
0x1080   :  { %1196 = vmatmul.mubr.msk.f32.vlgmr.msra.gmra.mrb[12].mxu0 %vm174_vm2, %v751_v1 }
0x1081   :  { %1217 = vmatprep.mubr.msk.f32.mxu0 %vm1316_vm1, %v1317_v4  ;;  %1274 = vmatpush3.bf16.msra.mxu0 %v1273_v33 }
0x1082   :  { %1275 = vmatprep.subr.bf16.mxu0 %v1315_v0 }
0x1085   :  { %1277 = vmatpush3.bf16.msra.mxu0 %v1276_v35 }
0x1153   :  { %v820_v3 = vpop.f32.mrb[12].mxu0 }
0x1154   :  { %v824_v5 = vadd.f32 %v820_v3, %v162_v2  ;;  %v1197_v6 = vpop.f32.mrb[13].mxu0 }
0x1156   :  { %1307 = vtanh.f32 %v824_v5 }
0x1160   :  { %v1308_v7 = vpop.eup %1307 }
0x1161   :  { %830 = vrot.lane.b32.xlu0 %v1308_v7, %s1318_s13  ;;  %v826_v9 = vmul.f32 0.5, %v1308_v7 }
0x1163   :  { %v827_v10 = vadd.f32 0.5, %v826_v9 }
0x1165   :  { %v828_v15 = vmul.f32 %v827_v10, %v742_v62 }
0x11d3   :  { %v831_v11 = vpop.permute.xlu0 %830 }
0x11d4   :  { %v833_v14 = vmul.f32 %v831_v11, %v827_v10 }
0x11d6   :  { %835 = vrot.lane.b32.xlu1 %v833_v14, %s1319_s14 }
0x1248   :  { %v836_v16 = vpop.permute.xlu1 %835 }
0x1249   :  { %v838_v17 = vadd.f32 %v836_v16, %v828_v15 }
0x124b   :  { %1309 = vtanh.f32 %v838_v17 }
0x1255   :  { %v1310_v4 = vpop.eup %1309 }
0x1256   :  { %841 = vrot.lane.b32.xlu0 %v1310_v4, %s1318_s13 }
0x12c8   :  { %v842_v58 = vpop.permute.xlu0 %841 }
0x12c9   :  { %v844_v18 = vmul.f32 %v842_v58, %v827_v10 }
0x12cb   :  { %846 = vrot.lane.b32.xlu1 %v844_v18, %s1319_s14 }
0x133d   :  { %v847_v19 = vpop.permute.xlu1 %846 }
0x133e   :  { %1207 = vmatmul.mubr.msk.f32.vlgmr.msra.gmra.mrb[8].mxu1 %vm174_vm2, %v847_v19 }
0x1411   :  { %v916_v21 = vpop.f32.mrb[8].mxu1 }
0x1412   :  { %v920_v22 = vadd.f32 %v916_v21, %v167_v20  ;;  %v1208_v23 = vpop.f32.mrb[9].mxu1 }
0x1414   :  { %1311 = vtanh.f32 %v920_v22 }
0x141e   :  { %v1312_v24 = vpop.eup %1311 }
0x141f   :  { %926 = vrot.lane.b32.xlu0 %v1312_v24, %s1318_s13  ;;  %v922_v25 = vmul.f32 0.5, %v1312_v24 }
0x1421   :  { %v923_v26 = vadd.f32 0.5, %v922_v25 }
0x1423   :  { %v924_v29 = vmul.f32 %v923_v26, %v838_v17 }
0x1491   :  { %v927_v27 = vpop.permute.xlu0 %926 }
0x1492   :  { %v929_v28 = vmul.f32 %v927_v27, %v923_v26 }
0x1494   :  { %931 = vrot.lane.b32.xlu1 %v929_v28, %s1319_s14 }
0x1506   :  { %v932_v30 = vpop.permute.xlu1 %931 }
0x1507   :  { %v934_v31 = vadd.f32 %v932_v30, %v924_v29 }
0x1509   :  { %1313 = vtanh.f32 %v934_v31 }
0x1513   :  { %v1314_v36 = vpop.eup %1313 }
0x1514   :  { %937 = vrot.lane.b32.xlu0 %v1314_v36, %s1318_s13 }
0x1586   :  { %v938_v37 = vpop.permute.xlu0 %937 }
0x1587   :  { %v940_v38 = vmul.f32 %v938_v37, %v923_v26 }
0x1589   :  { %953 = vrot.lane.b32.xlu1 %v940_v38, %s1319_s14 }
0x15fb   :  { %v954_v39 = vpop.permute.xlu1 %953 }
0x15fc   :  { %1218 = vmatmul.mubr.msk.f32.vlgmr.msra.gmra.mrb[14].mxu0 %vm174_vm2, %v954_v39 }
0x16cf   :  { %v1023_v41 = vpop.f32.mrb[14].mxu0 }
0x16d0   :  { %v1024_v42 = vadd.f32 %v1048_v40, %v1023_v41  ;;  %v1219_v43 = vpop.f32.mrb[15].mxu0 }
0x16d2   :  { %1027 = vst [vmem:[%s1551_s6] sm:$0xff] %v1024_v42 }

</bundles_post_ra>
